<compile_context>
chip_gen: v5e
topology: v5e:2x2
jax: 0.10.0
libtpu: 0.0.40
codegen_flags: <defaults>
</compile_context>

<pallas_src>
import jax
import jax.numpy as jnp
from jax.experimental import pallas as pl
from jax.experimental.pallas import tpu as pltpu


def identity_kernel(x_ref, o_ref):
    # Pure pass-through of the current tile.
    o_ref[...] = x_ref[...]


def _sublane_multiple(itemsize):
    # f32 -> 8 rows/vreg, bf16 -> 16, int8/fp8 -> 32 (sub-32-bit packs sublanes).
    return 8 * max(1, 4 // max(1, itemsize))


def _lane_dense_2d(total, sublane_mult, max_c=8192):
    """Pick a (R, C) view of the contiguous buffer with C a multiple of 128.

    Prefers the widest C (<= max_c) such that R = total // C is a multiple of
    the dtype's sublane packing, so row tiles are never ragged w.r.t. packing
    and every store is a full unmasked vst. Returns None if total is not a
    multiple of 128 (caller uses the natural full-width fallback view).
    """
    if total % 128 != 0:
        return None
    divisors = [c for c in range(128, min(total, max_c) + 1, 128) if total % c == 0]
    if not divisors:
        return None
    good = [c for c in divisors if (total // c) % sublane_mult == 0]
    if not good:
        good = [c for c in divisors if (total // c) >= sublane_mult] or divisors
    best_c = max(good)
    return total // best_c, best_c


def _row_tile(rows, cols, itemsize, sublane_mult, target_bytes=4 * 1024 * 1024):
    """Row-tile size: ~target_bytes per tile, a multiple of the sublane packing,
    and small enough that the parallel grid has >= 2 steps on biggish arrays
    (v7x has 2 TensorCores; a grid of 1 forfeits half its copy bandwidth)."""
    bytes_per_row = cols * itemsize
    tr = (target_bytes // bytes_per_row) // sublane_mult * sublane_mult
    tr = max(sublane_mult, tr)
    # Ensure >= 2 grid steps once the array is >= 2 MiB and splittable.
    if rows * bytes_per_row >= (1 << 21) and rows >= 2 * sublane_mult:
        half_rows = (rows + 1) // 2
        half_rows = -(-half_rows // sublane_mult) * sublane_mult  # ceil to mult
        tr = min(tr, half_rows)
    if tr >= rows:
        return rows  # whole (small) array in one legal full-dim block
    return tr


def identity(x):
    """Pallas Identity: returns a tensor equal to x (same shape, dtype)."""
    orig_shape = x.shape
    orig_dtype = x.dtype
    total = x.size

    if total == 0:
        return x

    itemsize = x.dtype.itemsize
    sublane_mult = _sublane_multiple(itemsize)

    shape2d = _lane_dense_2d(total, sublane_mult)
    if shape2d is None:
        # Element count not a multiple of 128: natural contiguous 2D view with
        # a full-width last dim (block last-dim == array dim is always legal).
        if len(orig_shape) >= 2:
            lead = 1
            for d in orig_shape[:-1]:
                lead *= d
            shape2d = (lead, orig_shape[-1])
        else:
            shape2d = (1, total)

    R, C = shape2d
    flat = x.reshape(R, C)

    tr = _row_tile(R, C, itemsize, sublane_mult)
    grid = (pl.cdiv(R, tr),)  # ragged last tile is fine (masked writes)

    # Double-buffered in + out tiles plus headroom. Explicit because v5e's
    # default scoped VMEM is only 16 MiB; capped at 48 MiB so it is always
    # safe on v7x's 64 MiB physical VMEM.
    tile_bytes = tr * C * itemsize
    vmem_limit = int(min(48 * 1024 * 1024,
                         max(4 * tile_bytes + (1 << 20), 8 * 1024 * 1024)))

    out = pl.pallas_call(
        identity_kernel,
        out_shape=jax.ShapeDtypeStruct((R, C), orig_dtype),
        grid=grid,
        in_specs=[pl.BlockSpec((tr, C), lambda i: (i, 0))],
        out_specs=pl.BlockSpec((tr, C), lambda i: (i, 0)),
        # Let XLA alias/donate the input buffer to the output.
        input_output_aliases={0: 0},
        compiler_params=pltpu.CompilerParams(
            dimension_semantics=("parallel",),
            vmem_limit_bytes=vmem_limit,
        ),
        # 0 flops, pure bandwidth: read + write of the whole array.
        cost_estimate=pl.CostEstimate(
            flops=0,
            transcendentals=0,
            bytes_accessed=2 * total * itemsize,
        ),
    )(flat)

    return out.reshape(orig_shape)


if __name__ == "__main__":
    key = jax.random.PRNGKey(0)
    # Shape consistent with a typical NCHW conv-style input: batch=2, ch=4, 16x16
    x = jax.random.normal(key, (2, 4, 16, 16), dtype=jnp.float32)

    y = identity(x)
    y = jax.block_until_ready(y)

    assert y.shape == x.shape
    assert y.dtype == x.dtype
    assert bool(jnp.all(y == x))

    print("KERNEL_OK")
</pallas_src>

<mosaic_0001>
module attributes {stable_mosaic.version = 11 : i64} {
  func.func @identity_kernel(%arg0: i32, %arg1: memref<8x256xf32, #tpu.memory_space<vmem>>, %arg2: memref<8x256xf32, #tpu.memory_space<vmem>>) attributes {dimension_semantics = [#tpu.dimension_semantics<parallel>], iteration_bounds = array<i64: 1>, scalar_prefetch = 0 : i64, scratch_operands = 0 : i64, tpu.core_type = #tpu.core_type<tc>, window_params = [{transform_indices = @transform_0, window_bounds = array<i64: 8, 256>}, {transform_indices = @transform_1, window_bounds = array<i64: 8, 256>}]} {
    %c0 = arith.constant 0 : index
    %c0_0 = arith.constant 0 : index
    %0 = vector.load %arg1[%c0, %c0_0] : memref<8x256xf32, #tpu.memory_space<vmem>>, vector<8x256xf32>
    %c0_1 = arith.constant 0 : index
    %c0_2 = arith.constant 0 : index
    %1 = vector.load %arg2[%c0_1, %c0_2] : memref<8x256xf32, #tpu.memory_space<vmem>>, vector<8x256xf32>
    tpu.vector_store %arg2[%c0_1, %c0_2], %0 {strides = array<i32>} : memref<8x256xf32, #tpu.memory_space<vmem>>, vector<8x256xf32>,
    return
  }
  func.func @transform_0(%arg0: i32) -> (i32, i32) {
    %c0_i32 = arith.constant 0 : i32
    %c0_i32_0 = arith.constant 0 : i32
    return %arg0, %c0_i32 : i32, i32
  }
  func.func @transform_1(%arg0: i32) -> (i32, i32) {
    %c0_i32 = arith.constant 0 : i32
    %c0_i32_0 = arith.constant 0 : i32
    return %arg0, %c0_i32 : i32, i32
  }
}

</mosaic_0001>

<bundles_post_ra>
// kernel: tpu_custom_call.1
= control target key start
LH: loop header
LB: loop body
LE: loop exit
PB: predicated region body
PF: predicated region fallthrough
CT: control target
= control target key end

     0   :  { %6 = vsyncpa [#allocation3], 0  ;;  %s116_s0 = inlined_call_operand.hbm [shape: f32[8,256], index: 0, kind: input, shape index: {}, may-alias: {0,1}]   ;;  %s117_s1 = inlined_call_operand.hbm [shape: f32[8,256], index: 1, kind: output, shape index: {}, may-alias: {0,1}]  }
   0x1   :  { %7 = vsyncpa [#allocation4], 0  ;;  %s13_s8 = sshll.u32 %s116_s0, 4  ;;  %s98_s9 = smov [#allocation2]   ;;  %s14_s8 = int_to_ptr.hbm [resolvable:$true] %s13_s8 }
   0x2   :  { %s15_s10 = sshll.u32 %s98_s9, 4  ;;  %s16_s10 = int_to_ptr.vmem [resolvable:$true] %s15_s10 }
   0x3   :  { %18 = dma.hbm_to_vmem [thread:$0]  %s14_s8, 256, %s16_s10, [#allocation3]  }
   0x4   :  { %94 = dma.done.wait [#allocation3], 256  }
   0x5   :  { %95 = vsyncadd [#allocation3], 4294967040  ;;  %s99_s11 = smov [#allocation5]   ;;  %s34_s15 = sshll.u32 %s117_s1, 4  ;;  %v23_v0 = vld [vmem:[#allocation2] sm:$0xff]  ;;  %v24_v1 = vld [vmem:[#allocation2 + $0x8] sm:$0xff]  ;;  %s35_s15 = int_to_ptr.hbm [resolvable:$true] %s34_s15 }
   0x6   :  { %s32_s12 = sshll.u32 %s99_s11, 4  ;;  %25 = vst [vmem:[#allocation5] sm:$0xff] %v23_v0  ;;  %s33_s12 = int_to_ptr.vmem [resolvable:$true] %s32_s12 }
   0x7   :  { %26 = vst [vmem:[#allocation5 + $0x8] sm:$0xff] %v24_v1 }
   0x8   :  { %37 = dma.vmem_to_hbm [thread:$0]  %s33_s12, 256, %s35_s15, [#allocation4]  }
   0x9   :  { %96 = dma.done.wait [#allocation4], 256  }
   0xa   :  { %97 = vsyncadd [#allocation4], 4294967040 }
   0xb   :  { %42 = vsyncpa [#allocation3], 1 }
   0xc   :  { %43 = vsyncpa [#allocation4], 1 }

</bundles_post_ra>
